<compile_context>
chip_gen: v5e
topology: v5e:2x2
jax: 0.10.0
libtpu: 0.0.40
codegen_flags: <defaults>
</compile_context>

<pallas_src>
import functools

import jax
import jax.numpy as jnp
from jax.experimental import pallas as pl
from jax.experimental.pallas import tpu as pltpu

_LANE = 128     # vreg lane width  (last dim must be lane-dense or full-dim)
_SUBLANE = 8    # vreg sublane width (second-to-last dim)


def _round_up(x, m):
    return (x + m - 1) // m * m


def _fused_dense_block_kernel(*refs, acts, out_dim, matmul_dtype):
    """Fused forward over ALL layers of the block for one batch tile.

    refs = (x_ref, w_0, s_0, w_1, s_1, ..., w_{L-1}, s_{L-1}, o_ref)
      x_ref : [tm, Din0_pad]            matmul_dtype (bf16) batch tile  -- no in-kernel cast
      w_l   : [Din_l_pad, Dout_l_pad]   matmul_dtype (BN folded, pre-transposed, zero-padded)
      s_l   : [1, Dout_l_pad]           f32  (bias*bn_scale + bn_shift, zero-padded)
      o_ref : [tm, out_dim]             true (un-padded) output feature dim
    Intermediate activations never leave VMEM/vregs (no HBM round-trips between layers).
    """
    x_ref = refs[0]
    o_ref = refs[-1]
    n_layers = len(acts)
    h = x_ref[...]                                   # already bf16: layer-0 cast removed
    for l, act in enumerate(acts):
        w_ref = refs[1 + 2 * l]
        s_ref = refs[2 + 2 * l]
        y = jnp.dot(h, w_ref[...], preferred_element_type=jnp.float32)
        y = y + s_ref[...]                           # folded Linear bias + BatchNorm1d (eval)
        if l != n_layers - 1:
            # Intermediate layers: run the activation in the matmul dtype (bf16). The
            # next matmul consumes bf16 anyway, and bf16 tanh/sigmoid use the v6e/v7x
            # EUP at double packing. Final layer stays f32 for output precision.
            y = y.astype(matmul_dtype)
        if act == "relu":
            y = jnp.maximum(y, 0)
        elif act == "tanh":
            y = jnp.tanh(y)
        elif act == "sigmoid":
            y = jax.nn.sigmoid(y)
        else:
            raise ValueError(f"unknown activation: {act}")
        h = y
        # TODO(synk): Dropout is identity here (eval mode).
    # Store only the true output features (lane-masked narrow store; 8x less writeback
    # than the 128-padded variant and no post-kernel slice pass).
    o_ref[...] = h[:, :out_dim].astype(o_ref.dtype)


def init_dense_block_params(key, dims):
    """Deterministic parameter init matching nn.Linear / nn.BatchNorm1d shapes."""
    params = []
    for in_dim, out_dim in zip(dims, dims[1:]):
        key, kw, kb, kg, kbe, km, kv = jax.random.split(key, 7)
        bound = 1.0 / jnp.sqrt(in_dim)
        w = jax.random.uniform(kw, (out_dim, in_dim), jnp.float32, -bound, bound)
        b = jax.random.uniform(kb, (out_dim,), jnp.float32, -bound, bound)
        gamma = 1.0 + 0.1 * jax.random.normal(kg, (out_dim,), jnp.float32)
        beta = 0.1 * jax.random.normal(kbe, (out_dim,), jnp.float32)
        running_mean = 0.1 * jax.random.normal(km, (out_dim,), jnp.float32)
        running_var = 1.0 + 0.1 * jnp.abs(jax.random.normal(kv, (out_dim,), jnp.float32))
        params.append((w, b, gamma, beta, running_mean, running_var))
    return params


def prepare_dense_block_params(params, activations, eps=1e-5,
                               matmul_dtype=jnp.bfloat16):
    """Fold BN(eval)+bias into the weights, pre-transpose to [Din, Dout], and pad
    feature dims up to lane-dense multiples of 128. Done once, off the hot path."""
    n_layers = len(params)
    acts = list(activations)
    if len(acts) == 1:
        acts = acts * n_layers
    assert len(acts) == n_layers, "number of activation functions is invalid"

    wts, shifts = [], []
    for (w, b, gamma, beta, mean, var) in params:
        dout, din = w.shape
        bn_scale = gamma / jnp.sqrt(var + eps)
        w_fold = w * bn_scale[:, None]                      # W' = W * bn_scale
        shift = b * bn_scale + (beta - mean * bn_scale)     # b' = b*scale + shift
        din_p, dout_p = _round_up(din, _LANE), _round_up(dout, _LANE)
        wt = jnp.zeros((din_p, dout_p), jnp.float32).at[:din, :dout].set(w_fold.T)
        sh = jnp.zeros((1, dout_p), jnp.float32).at[:, :dout].set(shift)
        wts.append(wt.astype(matmul_dtype))                 # bf16 MXU inputs
        shifts.append(sh)                                   # f32 bias/shift
    out_dim = params[-1][0].shape[0]
    return wts, shifts, acts, out_dim


def dense_block_forward(x, prepped, *, block_m=1024):
    """Run the whole DenseBlock in a single pallas_call, tiled over the batch axis."""
    wts, shifts, acts, out_dim = prepped
    B, din = x.shape
    din_p = wts[0].shape[0]
    matmul_dtype = wts[0].dtype
    assert din <= din_p

    # Batch tile: biggest multiple of 8 up to block_m, but guarantee >= 2 grid steps
    # whenever B allows so dimension_semantics=("parallel",) shards the batch across
    # both v7x TensorCores (free on single-TC v5e/v6e).
    tm = _round_up(min(B, block_m), _SUBLANE)
    if B >= 2 * _SUBLANE:
        tm = min(tm, _round_up(pl.cdiv(B, 2), _SUBLANE))
    grid_m = pl.cdiv(B, tm)

    # Feature-pad + bf16 cast as ONE fused pass; no batch pre-pad (the grid uses cdiv
    # and Pallas masks the partial last block's loads/stores). Zero-padded weight rows
    # guarantee padded feature lanes never contaminate valid outputs.
    x_p = x.astype(matmul_dtype)
    if din_p != din:
        x_p = jnp.pad(x_p, ((0, 0), (0, din_p - din)))

    operands = [x_p]
    for wt, sh in zip(wts, shifts):
        operands.extend([wt, sh])

    # Generation-aware VMEM cap (v5e/v6e: 128 MiB, v7x: 64 MiB per core), with headroom.
    try:
        vmem_cap = int(pltpu.get_tpu_info().vmem_capacity_bytes)
    except Exception:
        vmem_cap = 64 << 20   # conservative fallback (v7x per-core VMEM)
    usable = (vmem_cap * 7) // 8

    out_itemsize = jnp.dtype(x.dtype).itemsize
    weight_bytes = sum(int(w.nbytes) + int(s.nbytes) for w, s in zip(wts, shifts))

    def budget(weight_copies):
        b = weight_copies * weight_bytes                             # resident weights/shifts
        b += 2 * tm * din_p * jnp.dtype(matmul_dtype).itemsize       # double-buffered x tile (bf16)
        b += 2 * tm * out_dim * out_itemsize                         # double-buffered out tile
        b += sum(tm * int(w.shape[1]) * 4 for w in wts)              # f32 intermediates (conservative)
        return int(b)

    # TODO(synk): once resident weights approach the VMEM cap, add a fallback that
    # tiles the widest layer over its output dim instead of asserting.
    assert budget(1) <= usable, (
        f"DenseBlock padded weights ({weight_bytes / 2**20:.1f} MiB) do not fit in "
        f"usable VMEM ({usable / 2**20:.1f} MiB)")

    kernel = functools.partial(_fused_dense_block_kernel, acts=tuple(acts),
                               out_dim=out_dim, matmul_dtype=matmul_dtype)
    out_shape = jax.ShapeDtypeStruct((B, out_dim), x.dtype)

    def run(single_buffer_weights):
        in_specs = [pl.BlockSpec((tm, din_p), lambda i: (i, 0))]
        for wt, sh in zip(wts, shifts):
            # Constant block index -> weights/shifts DMA'd once and stay VMEM-resident.
            if single_buffer_weights:
                in_specs.append(pl.BlockSpec(wt.shape, lambda i: (0, 0),
                                             pipeline_mode=pl.Buffered(1)))
                in_specs.append(pl.BlockSpec(sh.shape, lambda i: (0, 0),
                                             pipeline_mode=pl.Buffered(1)))
            else:
                in_specs.append(pl.BlockSpec(wt.shape, lambda i: (0, 0)))
                in_specs.append(pl.BlockSpec(sh.shape, lambda i: (0, 0)))
        weight_copies = 1 if single_buffer_weights else 2
        vmem_limit = int(min(max(budget(weight_copies) * 5 // 4, 32 << 20), usable))
        return pl.pallas_call(
            kernel,
            out_shape=out_shape,
            grid=(grid_m,),
            in_specs=in_specs,
            out_specs=pl.BlockSpec((tm, out_dim), lambda i: (i, 0)),
            compiler_params=pltpu.CompilerParams(
                dimension_semantics=("parallel",),   # batch axis shards across TCs (v7x megacore)
                vmem_limit_bytes=vmem_limit),
        )(*operands)

    try:
        # Single-buffered resident weights (constant index map needs no double buffer).
        return run(True)
    except Exception:
        # Fallback if this JAX build rejects pipeline_mode=pl.Buffered(1).
        return run(False)


if __name__ == "__main__":
    dims = [32, 64, 16]                 # DenseBlock(dims=[32, 64, 16])
    activations = ["relu", "tanh"]      # one activation per layer
    batch = 20                          # small; exercises 2 grid steps + masked last tile

    key = jax.random.PRNGKey(0)
    key, kx = jax.random.split(key)
    x = jax.random.normal(kx, (batch, dims[0]), jnp.float32)
    params = init_dense_block_params(key, dims)

    prepped = prepare_dense_block_params(params, activations)
    out = dense_block_forward(x, prepped)
    out = jax.block_until_ready(out)
    assert out.shape == (batch, dims[-1]), out.shape

    # Pure-JAX reference using identical folded / padded / bf16-cast parameters.
    wts, shifts, acts, out_dim = prepped
    act_fns = {"relu": jax.nn.relu, "tanh": jnp.tanh, "sigmoid": jax.nn.sigmoid}
    din_p = wts[0].shape[0]
    h = jnp.pad(x.astype(wts[0].dtype), ((0, 0), (0, din_p - dims[0])))
    for l, (wt, sh, act) in enumerate(zip(wts, shifts, acts)):
        y = jnp.dot(h, wt, preferred_element_type=jnp.float32) + sh
        if l != len(acts) - 1:
            y = y.astype(wt.dtype)
        h = act_fns[act](y)
    ref = h[:, :out_dim].astype(x.dtype)
    max_err = float(jnp.max(jnp.abs(out - ref)))
    assert jnp.allclose(out, ref, atol=2e-2, rtol=2e-2), max_err

    print("KERNEL_OK")
</pallas_src>

<mosaic_0001>
module attributes {stable_mosaic.version = 11 : i64} {
  func.func @_fused_dense_block_kernel(%arg0: i32, %arg1: memref<16x128xbf16, #tpu.memory_space<vmem>>, %arg2: memref<128x128xbf16, #tpu.memory_space<vmem>>, %arg3: memref<1x128xf32, #tpu.memory_space<vmem>>, %arg4: memref<128x128xbf16, #tpu.memory_space<vmem>>, %arg5: memref<1x128xf32, #tpu.memory_space<vmem>>, %arg6: memref<16x16xf32, #tpu.memory_space<vmem>>) attributes {dimension_semantics = [#tpu.dimension_semantics<parallel>], iteration_bounds = array<i64: 2>, scalar_prefetch = 0 : i64, scratch_operands = 0 : i64, tpu.core_type = #tpu.core_type<tc>, window_params = [{transform_indices = @transform_0, window_bounds = array<i64: 16, 128>}, {pipeline_mode = #tpu.pipeline_mode<synchronous>, transform_indices = @transform_1, window_bounds = array<i64: 128, 128>}, {pipeline_mode = #tpu.pipeline_mode<synchronous>, transform_indices = @transform_2, window_bounds = array<i64: 1, 128>}, {pipeline_mode = #tpu.pipeline_mode<synchronous>, transform_indices = @transform_3, window_bounds = array<i64: 128, 128>}, {pipeline_mode = #tpu.pipeline_mode<synchronous>, transform_indices = @transform_4, window_bounds = array<i64: 1, 128>}, {transform_indices = @transform_5, window_bounds = array<i64: 16, 16>}]} {
    %c0 = arith.constant 0 : index
    %c0_0 = arith.constant 0 : index
    %0 = vector.load %arg1[%c0, %c0_0] : memref<16x128xbf16, #tpu.memory_space<vmem>>, vector<16x128xbf16>
    %c0_1 = arith.constant 0 : index
    %c0_2 = arith.constant 0 : index
    %1 = vector.load %arg2[%c0_1, %c0_2] : memref<128x128xbf16, #tpu.memory_space<vmem>>, vector<128x128xbf16>
    %cst = arith.constant dense<0.000000e+00> : vector<16x128xf32>
    %2 = tpu.matmul %0, %1, %cst {dimension_numbers = #tpu.dot_dimension_numbers<[1], [0], [0], [1], [0, 0, 1, 1], [], []>} : vector<16x128xbf16>, vector<128x128xbf16>, vector<16x128xf32> -> vector<16x128xf32>
    %c0_3 = arith.constant 0 : index
    %c0_4 = arith.constant 0 : index
    %3 = vector.load %arg3[%c0_3, %c0_4] : memref<1x128xf32, #tpu.memory_space<vmem>>, vector<1x128xf32>
    %4 = vector.broadcast %3 : vector<1x128xf32> to vector<16x128xf32>
    %5 = arith.addf %2, %4 : vector<16x128xf32>
    %6 = arith.truncf %5 : vector<16x128xf32> to vector<16x128xbf16>
    %cst_5 = arith.constant 0.000000e+00 : bf16
    %7 = vector.broadcast %cst_5 : bf16 to vector<16x128xbf16>
    %8 = arith.maximumf %6, %7 : vector<16x128xbf16>
    %c0_6 = arith.constant 0 : index
    %c0_7 = arith.constant 0 : index
    %9 = vector.load %arg4[%c0_6, %c0_7] : memref<128x128xbf16, #tpu.memory_space<vmem>>, vector<128x128xbf16>
    %cst_8 = arith.constant dense<0.000000e+00> : vector<16x128xf32>
    %10 = tpu.matmul %8, %9, %cst_8 {dimension_numbers = #tpu.dot_dimension_numbers<[1], [0], [0], [1], [0, 0, 1, 1], [], []>} : vector<16x128xbf16>, vector<128x128xbf16>, vector<16x128xf32> -> vector<16x128xf32>
    %c0_9 = arith.constant 0 : index
    %c0_10 = arith.constant 0 : index
    %11 = vector.load %arg5[%c0_9, %c0_10] : memref<1x128xf32, #tpu.memory_space<vmem>>, vector<1x128xf32>
    %12 = vector.broadcast %11 : vector<1x128xf32> to vector<16x128xf32>
    %13 = arith.addf %10, %12 : vector<16x128xf32>
    %14 = math.tanh %13 : vector<16x128xf32>
    %15 = vector.extract_strided_slice %14 {offsets = [0, 0], sizes = [16, 16], strides = [1, 1]} : vector<16x128xf32> to vector<16x16xf32>
    %c0_11 = arith.constant 0 : index
    %c0_12 = arith.constant 0 : index
    %16 = vector.load %arg6[%c0_11, %c0_12] : memref<16x16xf32, #tpu.memory_space<vmem>>, vector<16x16xf32>
    tpu.vector_store %arg6[%c0_11, %c0_12], %15 {strides = array<i32>} : memref<16x16xf32, #tpu.memory_space<vmem>>, vector<16x16xf32>,
    return
  }
  func.func @transform_0(%arg0: i32) -> (i32, i32) {
    %c0_i32 = arith.constant 0 : i32
    %c0_i32_0 = arith.constant 0 : i32
    return %arg0, %c0_i32 : i32, i32
  }
  func.func @transform_1(%arg0: i32) -> (i32, i32) {
    %c0_i32 = arith.constant 0 : i32
    %c0_i32_0 = arith.constant 0 : i32
    %c0_i32_1 = arith.constant 0 : i32
    return %c0_i32, %c0_i32_0 : i32, i32
  }
  func.func @transform_2(%arg0: i32) -> (i32, i32) {
    %c0_i32 = arith.constant 0 : i32
    %c0_i32_0 = arith.constant 0 : i32
    %c0_i32_1 = arith.constant 0 : i32
    return %c0_i32, %c0_i32_0 : i32, i32
  }
  func.func @transform_3(%arg0: i32) -> (i32, i32) {
    %c0_i32 = arith.constant 0 : i32
    %c0_i32_0 = arith.constant 0 : i32
    %c0_i32_1 = arith.constant 0 : i32
    return %c0_i32, %c0_i32_0 : i32, i32
  }
  func.func @transform_4(%arg0: i32) -> (i32, i32) {
    %c0_i32 = arith.constant 0 : i32
    %c0_i32_0 = arith.constant 0 : i32
    %c0_i32_1 = arith.constant 0 : i32
    return %c0_i32, %c0_i32_0 : i32, i32
  }
  func.func @transform_5(%arg0: i32) -> (i32, i32) {
    %c0_i32 = arith.constant 0 : i32
    %c0_i32_0 = arith.constant 0 : i32
    return %arg0, %c0_i32 : i32, i32
  }
}

module attributes {stable_mosaic.version = 11 : i64} {
  func.func @_fused_dense_block_kernel(%arg0: i32, %arg1: memref<16x128xbf16, #tpu.memory_space<vmem>>, %arg2: memref<128x128xbf16, #tpu.memory_space<vmem>>, %arg3: memref<1x128xf32, #tpu.memory_space<vmem>>, %arg4: memref<128x128xbf16, #tpu.memory_space<vmem>>, %arg5: memref<1x128xf32, #tpu.memory_space<vmem>>, %arg6: memref<16x16xf32, #tpu.memory_space<vmem>>) attributes {dimension_semantics = [#tpu.dimension_semantics<parallel>], iteration_bounds = array<i64: 2>, scalar_prefetch = 0 : i64, scratch_operands = 0 : i64, tpu.core_type = #tpu.core_type<tc>, window_params = [{transform_indices = @transform_0, window_bounds = array<i64: 16, 128>}, {pipeline_mode = #tpu.pipeline_mode<synchronous>, transform_indices = @transform_1, window_bounds = array<i64: 128, 128>}, {pipeline_mode = #tpu.pipeline_mode<synchronous>, transform_indices = @transform_2, window_bounds = array<i64: 1, 128>}, {pipeline_mode = #tpu.pipeline_mode<synchronous>, transform_indices = @transform_3, window_bounds = array<i64: 128, 128>}, {pipeline_mode = #tpu.pipeline_mode<synchronous>, transform_indices = @transform_4, window_bounds = array<i64: 1, 128>}, {transform_indices = @transform_5, window_bounds = array<i64: 16, 16>}]} {
    %c0 = arith.constant 0 : index
    %c0_0 = arith.constant 0 : index
    %0 = vector.load %arg1[%c0, %c0_0] : memref<16x128xbf16, #tpu.memory_space<vmem>>, vector<16x128xbf16>
    %c0_1 = arith.constant 0 : index
    %c0_2 = arith.constant 0 : index
    %1 = vector.load %arg2[%c0_1, %c0_2] : memref<128x128xbf16, #tpu.memory_space<vmem>>, vector<128x128xbf16>
    %cst = arith.constant dense<0.000000e+00> : vector<16x128xf32>
    %2 = tpu.matmul %0, %1, %cst {dimension_numbers = #tpu.dot_dimension_numbers<[1], [0], [0], [1], [0, 0, 1, 1], [], []>} : vector<16x128xbf16>, vector<128x128xbf16>, vector<16x128xf32> -> vector<16x128xf32>
    %c0_3 = arith.constant 0 : index
    %c0_4 = arith.constant 0 : index
    %3 = vector.load %arg3[%c0_3, %c0_4] : memref<1x128xf32, #tpu.memory_space<vmem>>, vector<1x128xf32>
    %4 = vector.broadcast %3 : vector<1x128xf32> to vector<16x128xf32>
    %5 = arith.addf %2, %4 : vector<16x128xf32>
    %6 = arith.truncf %5 : vector<16x128xf32> to vector<16x128xbf16>
    %cst_5 = arith.constant 0.000000e+00 : bf16
    %7 = vector.broadcast %cst_5 : bf16 to vector<16x128xbf16>
    %8 = arith.maximumf %6, %7 : vector<16x128xbf16>
    %c0_6 = arith.constant 0 : index
    %c0_7 = arith.constant 0 : index
    %9 = vector.load %arg4[%c0_6, %c0_7] : memref<128x128xbf16, #tpu.memory_space<vmem>>, vector<128x128xbf16>
    %cst_8 = arith.constant dense<0.000000e+00> : vector<16x128xf32>
    %10 = tpu.matmul %8, %9, %cst_8 {dimension_numbers = #tpu.dot_dimension_numbers<[1], [0], [0], [1], [0, 0, 1, 1], [], []>} : vector<16x128xbf16>, vector<128x128xbf16>, vector<16x128xf32> -> vector<16x128xf32>
    %c0_9 = arith.constant 0 : index
    %c0_10 = arith.constant 0 : index
    %11 = vector.load %arg5[%c0_9, %c0_10] : memref<1x128xf32, #tpu.memory_space<vmem>>, vector<1x128xf32>
    %12 = vector.broadcast %11 : vector<1x128xf32> to vector<16x128xf32>
    %13 = arith.addf %10, %12 : vector<16x128xf32>
    %14 = math.tanh %13 : vector<16x128xf32>
    %15 = vector.extract_strided_slice %14 {offsets = [0, 0], sizes = [16, 16], strides = [1, 1]} : vector<16x128xf32> to vector<16x16xf32>
    %c0_11 = arith.constant 0 : index
    %c0_12 = arith.constant 0 : index
    %16 = vector.load %arg6[%c0_11, %c0_12] : memref<16x16xf32, #tpu.memory_space<vmem>>, vector<16x16xf32>
    tpu.vector_store %arg6[%c0_11, %c0_12], %15 {strides = array<i32>} : memref<16x16xf32, #tpu.memory_space<vmem>>, vector<16x16xf32>,
    return
  }
  func.func @transform_0(%arg0: i32) -> (i32, i32) {
    %c0_i32 = arith.constant 0 : i32
    %c0_i32_0 = arith.constant 0 : i32
    return %arg0, %c0_i32 : i32, i32
  }
  func.func @transform_1(%arg0: i32) -> (i32, i32) {
    %c0_i32 = arith.constant 0 : i32
    %c0_i32_0 = arith.constant 0 : i32
    %c0_i32_1 = arith.constant 0 : i32
    return %c0_i32, %c0_i32_0 : i32, i32
  }
  func.func @transform_2(%arg0: i32) -> (i32, i32) {
    %c0_i32 = arith.constant 0 : i32
    %c0_i32_0 = arith.constant 0 : i32
    %c0_i32_1 = arith.constant 0 : i32
    return %c0_i32, %c0_i32_0 : i32, i32
  }
  func.func @transform_3(%arg0: i32) -> (i32, i32) {
    %c0_i32 = arith.constant 0 : i32
    %c0_i32_0 = arith.constant 0 : i32
    %c0_i32_1 = arith.constant 0 : i32
    return %c0_i32, %c0_i32_0 : i32, i32
  }
  func.func @transform_4(%arg0: i32) -> (i32, i32) {
    %c0_i32 = arith.constant 0 : i32
    %c0_i32_0 = arith.constant 0 : i32
    %c0_i32_1 = arith.constant 0 : i32
    return %c0_i32, %c0_i32_0 : i32, i32
  }
  func.func @transform_5(%arg0: i32) -> (i32, i32) {
    %c0_i32 = arith.constant 0 : i32
    %c0_i32_0 = arith.constant 0 : i32
    return %arg0, %c0_i32 : i32, i32
  }
}

</mosaic_0001>

<bundles_post_ra>
// kernel: tpu_custom_call.1
= control target key start
LH: loop header
LB: loop body
LE: loop exit
PB: predicated region body
PF: predicated region fallthrough
CT: control target
= control target key end

     0   :  { %10 = vsyncpa [#allocation3], 0  ;;  %s1400_s0 = inlined_call_operand.hbm [shape: bf16[20,128], index: 0, kind: input, shape index: {}]   ;;  %s1401_s1 = inlined_call_operand.hbm [shape: bf16[128,128], index: 1, kind: input, shape index: {}]   ;;  %s1402_s2 = inlined_call_operand.vmem [shape: f32[1,128], index: 2, kind: input, shape index: {}]   ;;  %s1403_s3 = inlined_call_operand.hbm [shape: bf16[128,128], index: 3, kind: input, shape index: {}]   ;;  %s1404_s4 = inlined_call_operand.vmem [shape: f32[1,128], index: 4, kind: input, shape index: {}]   ;;  %s1405_s5 = inlined_call_operand.vmem [shape: f32[20,16], index: 5, kind: output, shape index: {}]  }
   0x1   :  { %12 = vsyncpa [#allocation3 + $0x1], 0 }
   0x2   :  { %13 = vsyncpa [#allocation5], 0  ;;  %s1216_s18 = smov 0   ;;  %s1218_s19 = smov 0  }
   0x3   :  { %s1220_s20 = smov 0   ;;  %s1222_s21 = smov 0  }
   0x4 LB: > { %s1235_s22 = sadd.s32 4294967295, %s1145_s21   ;;  %s1238_s23 = sadd.s32 1, %s1145_s21   ;;  %s1145_s21 = sphi %s1222_s21, %s1417_s21   ;;  %s1141_s20 = sphi %s1220_s20, %s1416_s20   ;;  %s1137_s19 = sphi %s1218_s19, %s1415_s19   ;;  %s1133_s18 = sphi %s1216_s18, %s1414_s18  }
   0x5   : > { %s23_s24 = ssub.s32 %s1145_s21, %s1238_s23  ;;  %s26_s25 = sadd.s32 1, %s1141_s20 }
   0x6   : > { %p24_p0 = scmp.eq.s32.totalorder %s23_s24, 0  ;;  %p33_p1 = scmp.ne.s32.totalorder %s1141_s20, %s1137_s19 }
   0x7   : > { %p34_p2 = scmp.eq.s32.totalorder %s1145_s21, 0  ;;  %p39_p3 = scmp.ne.s32.totalorder %s1137_s19, %s1133_s18 }
   0x8   : > { %s1248_s26 = scalar_select %p24_p0, %s1141_s20, %s26_s25  }
   0x9   : > { %p1250_p4 = por %p34_p2, %p33_p1  ;;  %p1406_p5 = scmp.eq.s32.totalorder %s1235_s22, 0 }
   0xa   : > { %p147_p6 = scmp.eq.s32.totalorder %s1235_s22, 1  ;;  %p726_p7 = scmp.ge.s32.totalorder %s1145_s21, 1 }
   0xb   : > { %p1259_p8 = por %p1406_p5, %p39_p3  ;;  %p160_p9 = scmp.lt.s32.totalorder %s1145_s21, 3 }
   0xc   : > { %p1264_p10 = por %p147_p6, %p33_p1  ;;  %s171_s8 = sshll.u32 %s1401_s1, 4  ;;  %s172_s8 = int_to_ptr.hbm [resolvable:$true] %s171_s8 }
   0xd   : > { %p1268_p11 = pnand %p726_p7, %p160_p9  ;;  %s1179_s9 = smov [#allocation4]  }
   0xe   : > { %s173_s10 = sshll.u32 %s1179_s9, 4  ;;  %s188_s13 = sshll.u32 %s1403_s3, 4  ;;  %s174_s10 = int_to_ptr.vmem [resolvable:$true] %s173_s10  ;;  %s189_s13 = int_to_ptr.hbm [resolvable:$true] %s188_s13 }
   0xf   : > { %p857_p12 = pneg %p1268_p11  ;;  %s1180_s14 = smov 64  }
  0x10   : > { %s1181_s15 = smov 4   ;;  %s1182_s16 = smov [#allocation6]  }
  0x11   : > { %p858_p13 = pnand %p857_p12, %p1406_p5  ;;  %s190_s17 = sshll.u32 %s1182_s16, 4  ;;  %s191_s17 = int_to_ptr.vmem [resolvable:$true] %s190_s17 }
  0x12   : > { %p729_p0 = scmp.ge.s32.totalorder %s1145_s21, 2 }
  0x13   : > { %860 = dma.hbm_to_vmem [thread:$0]  (!%p858_p13), %s172_s8, 1024, %s174_s10, [#allocation5], %s1180_s14, %s1180_s14, %s1181_s15  }
  0x14   : > { %863 = dma.hbm_to_vmem [thread:$0]  (!%p858_p13), %s189_s13, 1024, %s191_s17, [#allocation5], %s1180_s14, %s1180_s14, %s1181_s15  }
  0x15   : > { %203 = sbr.rel (%p729_p0) target bundleno = 62 (0x3e), region = 32 }
  0x1a   : > { %206 = sbr.rel (!%p1250_p4) target bundleno = 62 (0x3e), region = 36  ;;  %s207_s18 = sand.u32 (%p1250_p4), 1, %s1141_s20  }
  0x1b   : > { %s731_s24 = sshll.u32 (%p1250_p4), %s1145_s21, 1  ;;  %s730_s25 = sshll.u32 (%p1250_p4), %s207_s18, 3 }
  0x1c   : > { %s213_s6 = ssub.s32 (%p1250_p4), 3, %s731_s24  ;;  %s1290_s10 = scalar_lea.sflag (%p1250_p4), [#allocation3], %s207_s18 }
  0x1d   : > { %p214_p1 = scmp.lt.s32.totalorder (%p1250_p4), %s213_s6, 2  ;;  %s211_s11 = scalar_lea.vmem (%p1250_p4), [#allocation2], %s730_s25 }
  0x1f   : > { %s1419_s6 = smov (!%p214_p1, %s213_s6), 2 }
  0x20   : > { %s732_s7 = sshll.u32 %s1419_s6, 2 }
  0x21   : > { %s217_s8 = ssub.s32 8, %s732_s7 }
  0x22   : > { %s218_s9 = sshll.u32 %s217_s8, 4 }
  0x23   : > { %219 = vsyncadd %s1290_s10, %s218_s9  ;;  %p1293_p2 = scmp.ne.s32.totalorder %s732_s7, 0  ;;  %s827_s12 = sshll.u32 %s1145_s21, 3 }
  0x24   : > { %s222_s15 = scalar_lea.hbm %s1400_s0, %s827_s12  ;;  %s1301_s16 = sshll.u32 %s211_s11, 4  ;;  %s227_s16 = int_to_ptr.vmem [resolvable:$true] %s1301_s16 }
  0x25   : > { %s224_s17 = sshll.u32 %s222_s15, 4  ;;  %s736_s18 = sshll.u32 %s1419_s6, 6  ;;  %s1304_s17 = int_to_ptr.hbm [resolvable:$true] %s224_s17 }
  0x26   : > { %s1036_s24 = sshra.s32 %s1304_s17, 4  ;;  %s1038_s25 = sshrl.u32 %s736_s18, 4  ;;  %s1037_s24 = int_to_ptr.hbm [resolvable:$true] %s1036_s24 }
  0x27   : > { %s1043_s7 = scalar_lea.hbm %s1037_s24, %s1038_s25  ;;  %s1047_s9 = scalar_lea.hbm %s1400_s0, 12 }
  0x28   : > { %p1044_p3 = scmp.ne.s32.totalorder %s1037_s24, %s1043_s7  ;;  %p1048_p7 = scmp.lt.s32.totalorder %s1037_s24, %s1400_s0 }
  0x29   : > { %p1049_p9 = scmp.lt.s32.totalorder %s1047_s9, %s1043_s7 }
  0x2a   : > { %p1045_p4 = pnand %p1044_p3, %p1293_p2 }
  0x2b   : > { %p1050_p12 = por %p1049_p9, %p1048_p7 }
  0x2c   : > { %p1046_p6 = pneg %p1045_p4 }
  0x2e   : > { %p1051_p13 = pnand %p1050_p12, %p1046_p6 }
  0x30   : > { %1054 = shalt.err (!%p1051_p13)
}
  0x31   : > { %s1055_s13 = sshra.s32 %s227_s16, 4  ;;  %s1183_s15 = smov [#allocation2]   ;;  %s1056_s13 = int_to_ptr.vmem [resolvable:$true] %s1055_s13 }
  0x32   : > { %s1062_s14 = scalar_lea.vmem %s1056_s13, %s1038_s25  ;;  %s1066_s21 = scalar_lea.vmem %s1183_s15, 16 }
  0x33   : > { %p1063_p0 = scmp.ne.s32.totalorder %s1056_s13, %s1062_s14  ;;  %p1068_p4 = scmp.lt.s32.totalorder %s1066_s21, %s1062_s14 }
  0x35   : > { %p1064_p1 = pnand %p1063_p0, %p1293_p2 }
  0x37   : > { %p1065_p3 = pneg %p1064_p1 }
  0x39   : > { %p1070_p5 = pnand %p1068_p4, %p1065_p3 }
  0x3b   : > { %1073 = shalt.err (!%p1070_p5)
}
  0x3c   : > { %s1184_s24 = smov 64   ;;  %s1185_s7 = smov 4  }
  0x3d   : > { %232 = dma.hbm_to_vmem [thread:$0]  (%p1293_p2), %s1304_s17, %s736_s18, %s227_s16, %s1290_s10, %s1184_s24, %s1184_s24, %s1185_s7  }
  0x3e PF: > { %238 = sbr.rel (%p1268_p11) target bundleno = 426 (0x1aa), region = 40  ;;  %s1333_s25 = sand.u32 (!%p1268_p11), 1, %s1137_s19  }
  0x3f   : > { %s738_s8 = sshll.u32 (!%p1268_p11), %s1333_s25, 3  ;;  %s241_s9 = scalar_lea.sflag (!%p1268_p11), [#allocation3], %s1333_s25 }
  0x40   : > { %s244_s11 = scalar_lea.vmem (!%p1268_p11), [#allocation2], %s738_s8 }
  0x43   : > { %1124 = dma.done.wait (%p1259_p8), %s241_s9, 128  }
  0x44   : > { %1126 = vsyncadd (%p1259_p8), %s241_s9, 4294967168  ;;  %p1412_p5 = scmp.eq.s32.totalorder %s1235_s22, 0 }
  0x46   : > { %1128 = dma.done.wait (%p1412_p5), [#allocation5], 2048   ;;  %p1413_p2 = pmov %p1412_p5 }
  0x47   : > { %v836_v0 = vld [vmem:[#allocation4 + $0x38] sm:$0xff]  ;;  %v835_v1 = vld [vmem:[#allocation4 + $0x30] sm:$0xff]  ;;  %v834_v4 = vld [vmem:[#allocation4 + $0x28] sm:$0xff]  ;;  %s741_s27 = sshll.u32 %s1333_s25, 4  ;;  %vm472_vm0 = vcmask 130048   ;;  %s811_s17 = sshll.u32 (%p1264_p10), %s1235_s22, 1 }
  0x48   : > { %1130 = vsyncadd (%p1413_p2), [#allocation5], 4294965248  ;;  %367 = vmatpush.bf16.msra.mxu0 %v836_v0  ;;  %v844_v2 = vld [vmem:[#allocation6 + $0x38] sm:$0xff]  ;;  %v843_v3 = vld [vmem:[#allocation6 + $0x30] sm:$0xff]  ;;  %s1352_s16 = scalar_lea.vmem [#allocation7], %s741_s27   ;;  %s845_s18 = sshll.u32 (%p1264_p10), %s1235_s22, 4 }
  0x49   : > { %456 = vmatpush.bf16.msra.mxu1 %v844_v2  ;;  %v842_v5 = vld [vmem:[#allocation6 + $0x28] sm:$0xff]  ;;  %v833_v6 = vld [vmem:[#allocation4 + $0x20] sm:$0xff]  ;;  %v832_v8 = vld [vmem:[#allocation4 + $0x18] sm:$0xff]  ;;  %s483_s12 = ssub.s32 (%p1264_p10), 3, %s811_s17  ;;  %s1363_s15 = scalar_lea.vmem (%p1264_p10), %s1405_s5, %s845_s18  }
  0x4a   : > { %v841_v7 = vld [vmem:[#allocation6 + $0x20] sm:$0xff]  ;;  %v831_v9 = vld [vmem:[#allocation4 + $0x10] sm:$0xff]  ;;  %v830_v10 = vld [vmem:[#allocation4 + $0x8] sm:$0xff]  ;;  %p484_p8 = scmp.lt.s32.totalorder (%p1264_p10), %s483_s12, 2 }
  0x4b   : > { %v829_v11 = vld [vmem:[#allocation4] sm:$0xff]  ;;  %v828_v12 = vld [vmem:[%s244_s11] sm:$0xff]  ;;  %v838_v15 = vld [vmem:[#allocation6 + $0x8] sm:$0xff] }
  0x4c   : > { %368 = vmatpush.bf16.msra.mxu0 %v835_v1  ;;  %v840_v13 = vld [vmem:[#allocation6 + $0x18] sm:$0xff]  ;;  %v839_v14 = vld [vmem:[#allocation6 + $0x10] sm:$0xff]  ;;  %v837_v16 = vld [vmem:[#allocation6] sm:$0xff] }
  0x4d   : > { %457 = vmatpush.bf16.msra.mxu1 %v843_v3  ;;  %v970_v18 = vld [vmem:[%s1402_s2] ss:$0 sm:$0xff] }
  0x4e   : > { %v971_v25 = vld [vmem:[%s1404_s4] ss:$0 sm:$0xff] }
  0x50   : > { %369 = vmatpush.bf16.msra.mxu0 %v834_v4 }
  0x51   : > { %458 = vmatpush.bf16.msra.mxu1 %v842_v5 }
  0x54   : > { %370 = vmatpush.bf16.msra.mxu0 %v833_v6 }
  0x55   : > { %459 = vmatpush.bf16.msra.mxu1 %v841_v7 }
  0x58   : > { %371 = vmatpush.bf16.msra.mxu0 %v832_v8 }
  0x59   : > { %460 = vmatpush.bf16.msra.mxu1 %v840_v13 }
  0x5c   : > { %372 = vmatpush.bf16.msra.mxu0 %v831_v9 }
  0x5d   : > { %461 = vmatpush.bf16.msra.mxu1 %v839_v14 }
  0x60   : > { %373 = vmatpush.bf16.msra.mxu0 %v830_v10 }
  0x61   : > { %462 = vmatpush.bf16.msra.mxu1 %v838_v15 }
  0x64   : > { %374 = vmatpush.bf16.msra.mxu0 %v829_v11 }
  0x65   : > { %463 = vmatpush.bf16.msra.mxu1 %v837_v16 }
  0x67   : > { %375 = vmatmul.bf16.vlgmr.msra.gmra.mxu0 %v828_v12 }
  0xe4   : > { %v376_v17 = vpop.f32.mrf.mxu0 }
  0xe5   : > { %v377_v19 = vadd.f32 %v970_v18, %v376_v17 }
  0xe7   : > { %v385_v22 = vmax.f32 %v377_v19, 0.0 }
  0xec   : > { %v378_v20 = vpop.f32.mrf.mxu0 }
  0xed   : > { %v379_v21 = vadd.f32 %v970_v18, %v378_v20 }
  0xef   : > { %v386_v23 = vmax.f32 %v379_v21, 0.0 }
  0xf1   : > { %v387_v24 = vpack.c.bf16 %v386_v23, %v385_v22 }
  0xf3   : > { %464 = vmatmul.bf16.vlgmr.msra.gmra.mxu1 %v387_v24 }
 0x170   : > { %v465_v26 = vpop.f32.mrf.mxu1 }
 0x171   : > { %v466_v27 = vadd.f32 %v971_v25, %v465_v26 }
 0x173   : > { %972 = vtanh.f32 %v466_v27 }
 0x178   : > { %v467_v28 = vpop.f32.mrf.mxu1 }
 0x179   : > { %v973_v29 = vpop.eup %972  ;;  %v468_v30 = vadd.f32 %v971_v25, %v467_v28 }
 0x17a   : > { %473 = vst.msk [vmem:[%s1352_s16] sm:$0xff] %vm472_vm0, %v973_v29 }
 0x17b   : > { %974 = vtanh.f32 %v468_v30 }
 0x17e   : > { %481 = sbr.rel (!%p1264_p10) target bundleno = 426 (0x1aa), region = 56 }
 0x181   : > { %v975_v31 = vpop.eup %974 }
 0x182   : > { %474 = vst.msk [vmem:[%s1352_s16 + $0x8] sm:$0xff] %vm472_vm0, %v975_v31 }
 0x183   : > { %s1421_s12 = smov (!%p484_p8, %s483_s12), 2 }
 0x184   : > { %s812_s21 = sshll.u32 %s1421_s12, 3 }
 0x185   : > { %p815_p11 = scmp.eq.s32.totalorder %s812_s21, 0 }
 0x186   : > { %s1369_s29 = sshrl.u32 (!%p815_p11), %s1421_s12, 1 }
 0x187   : > { %492 = sbr.rel (%p815_p11) target bundleno = 426 (0x1aa), region = 60  ;;  %p816_p10 = scmp.le.s32.totalorder (!%p815_p11), %s1369_s29, 0 }
 0x18c   : > { %660 = sbr.rel (%p816_p10) target bundleno = 409 (0x199), region = 142  ;;  %s1147_s22 = smov (!%p816_p10), %s1363_s15  }
 0x18d   : > { %s1151_s24 = smov (!%p816_p10), %s1352_s16   ;;  %s1155_s7 = smov (!%p816_p10), 0  }
 0x18e   : > { %s1159_s25 = smov (!%p816_p10), 0  }
 0x191 LB: >> { %v557_v32 = vld [vmem:[%s1153_s24] sm:$0xff]  ;;  %v559_v33 = vld [vmem:[%s1153_s24 + $0x8] sm:$0xff]  ;;  %s561_s8 = sadd.s32 1, %s1157_s7  ;;  %s551_s25 = sadd.s32 1, %s1161_s25   ;;  %s1161_s25 = sphi %s1159_s25, %s551_s25   ;;  %s1157_s7 = sphi %s1155_s7, %s1156_s7   ;;  %s1153_s24 = sphi %s1151_s24, %s566_s24   ;;  %s1149_s22 = sphi %s1147_s22, %s567_s22  }
 0x192   : >> { %558 = vst [vmem:[%s1149_s22] sm:$0xff] %v557_v32  ;;  %p562_p6 = scmp.ge.s32.totalorder %s561_s8, %s1369_s29  ;;  %p550_p7 = scmp.ge.s32.totalorder %s551_s25, %s1369_s29 }
 0x193   : >> { %560 = vst [vmem:[%s1149_s22 + $0x8] sm:$0xff] %v559_v33 }
 0x194   : >> { %s1423_s8 = smov (%p562_p6, %s561_s8), 0  ;;  %553 = sbr.rel (!%p550_p7) target bundleno = 401 (0x191), region = 148 }
 0x195   : >> { %s817_s9 = sshll.u32 %s1423_s8, 4  ;;  %s1156_s7 = smov %s1423_s8  }
 0x196   : >> { %s566_s24 = scalar_lea.vmem %s1352_s16, %s817_s9 [#allocation7]   ;;  %s567_s22 = scalar_lea.vmem %s1363_s15, %s817_s9  }
 0x199 PF: > { %s1379_s11 = sand.u32 1, %s1421_s12   ;;  %s846_s28 = sshll.u32 %s1369_s29, 4 }
 0x19a   : > { %s572_s30 = scalar_lea.vmem %s1352_s16, %s846_s28 [#allocation7]   ;;  %s574_s6 = scalar_lea.vmem %s1363_s15, %s846_s28  }
 0x19b   : > { %p822_p9 = scmp.le.s32.totalorder %s1379_s11, 0 }
 0x19c   : > { %s1163_s10 = smov (!%p822_p9), %s574_s6   ;;  %s1167_s27 = smov (!%p822_p9), %s572_s30  }
 0x19d   : > { %674 = sbr.rel (%p822_p9) target bundleno = 426 (0x1aa), region = 153  ;;  %s1171_s17 = smov (!%p822_p9), 0  }
 0x19e   : > { %s1175_s18 = smov (!%p822_p9), 0  }
 0x1a2 LB: >> { %v584_v34 = vld [vmem:[%s1169_s27] sm:$0xff]  ;;  %s586_s12 = sadd.s32 1, %s1173_s17  ;;  %s578_s18 = sadd.s32 1, %s1177_s18   ;;  %s1177_s18 = sphi %s1175_s18, %s578_s18   ;;  %s1173_s17 = sphi %s1171_s17, %s1172_s17   ;;  %s1169_s27 = sphi %s1167_s27, %s591_s27   ;;  %s1165_s10 = sphi %s1163_s10, %s592_s10  }
 0x1a3   : >> { %585 = vst [vmem:[%s1165_s10] sm:$0xff] %v584_v34  ;;  %p587_p12 = scmp.ge.s32.totalorder %s586_s12, %s1379_s11  ;;  %p577_p13 = scmp.ge.s32.totalorder %s578_s18, %s1379_s11 }
 0x1a5   : >> { %s1425_s12 = smov (%p587_p12, %s586_s12), 0  ;;  %580 = sbr.rel (!%p577_p13) target bundleno = 418 (0x1a2), region = 159 }
 0x1a6   : >> { %s823_s16 = sshll.u32 %s1425_s12, 3  ;;  %s1172_s17 = smov %s1425_s12  }
 0x1a7   : >> { %s591_s27 = scalar_lea.vmem %s572_s30, %s823_s16 [#allocation7]   ;;  %s592_s10 = scalar_lea.vmem %s574_s6, %s823_s16  }
 0x1aa PF: > { %p16_p0 = scmp.ge.s32.totalorder %s1238_s23, 4   ;;  %s1414_s18 = smov %s1137_s19 }
 0x1ab   : > { %s1415_s19 = smov %s1141_s20  ;;  %s1416_s20 = smov %s1248_s26 }
 0x1ac   : > { %s1417_s21 = smov %s1238_s23  ;;  %18 = sbr.rel (!%p16_p0) target bundleno = 4 (0x4), region = 170 }
 0x1b1   :  { %608 = vsyncpa [#allocation3], 1 }
 0x1b2   :  { %610 = vsyncpa [#allocation3 + $0x1], 1 }
 0x1b3   :  { %611 = vsyncpa [#allocation5], 1 }

// kernel: tpu_custom_call.1
= control target key start
LH: loop header
LB: loop body
LE: loop exit
PB: predicated region body
PF: predicated region fallthrough
CT: control target
= control target key end

     0   :  { %10 = vsyncpa [#allocation3], 0  ;;  %s1400_s0 = inlined_call_operand.hbm [shape: bf16[20,128], index: 0, kind: input, shape index: {}]   ;;  %s1401_s1 = inlined_call_operand.hbm [shape: bf16[128,128], index: 1, kind: input, shape index: {}]   ;;  %s1402_s2 = inlined_call_operand.vmem [shape: f32[1,128], index: 2, kind: input, shape index: {}]   ;;  %s1403_s3 = inlined_call_operand.hbm [shape: bf16[128,128], index: 3, kind: input, shape index: {}]   ;;  %s1404_s4 = inlined_call_operand.vmem [shape: f32[1,128], index: 4, kind: input, shape index: {}]   ;;  %s1405_s5 = inlined_call_operand.vmem [shape: f32[20,16], index: 5, kind: output, shape index: {}]  }
   0x1   :  { %12 = vsyncpa [#allocation3 + $0x1], 0 }
   0x2   :  { %13 = vsyncpa [#allocation5], 0  ;;  %s1216_s18 = smov 0   ;;  %s1218_s19 = smov 0  }
   0x3   :  { %s1220_s20 = smov 0   ;;  %s1222_s21 = smov 0  }
   0x4 LB: > { %s1235_s22 = sadd.s32 4294967295, %s1145_s21   ;;  %s1238_s23 = sadd.s32 1, %s1145_s21   ;;  %s1145_s21 = sphi %s1222_s21, %s1417_s21   ;;  %s1141_s20 = sphi %s1220_s20, %s1416_s20   ;;  %s1137_s19 = sphi %s1218_s19, %s1415_s19   ;;  %s1133_s18 = sphi %s1216_s18, %s1414_s18  }
   0x5   : > { %s23_s24 = ssub.s32 %s1145_s21, %s1238_s23  ;;  %s26_s25 = sadd.s32 1, %s1141_s20 }
   0x6   : > { %p24_p0 = scmp.eq.s32.totalorder %s23_s24, 0  ;;  %p33_p1 = scmp.ne.s32.totalorder %s1141_s20, %s1137_s19 }
   0x7   : > { %p34_p2 = scmp.eq.s32.totalorder %s1145_s21, 0  ;;  %p39_p3 = scmp.ne.s32.totalorder %s1137_s19, %s1133_s18 }
   0x8   : > { %s1248_s26 = scalar_select %p24_p0, %s1141_s20, %s26_s25  }
   0x9   : > { %p1250_p4 = por %p34_p2, %p33_p1  ;;  %p1406_p5 = scmp.eq.s32.totalorder %s1235_s22, 0 }
   0xa   : > { %p147_p6 = scmp.eq.s32.totalorder %s1235_s22, 1  ;;  %p726_p7 = scmp.ge.s32.totalorder %s1145_s21, 1 }
   0xb   : > { %p1259_p8 = por %p1406_p5, %p39_p3  ;;  %p160_p9 = scmp.lt.s32.totalorder %s1145_s21, 3 }
   0xc   : > { %p1264_p10 = por %p147_p6, %p33_p1  ;;  %s171_s8 = sshll.u32 %s1401_s1, 4  ;;  %s172_s8 = int_to_ptr.hbm [resolvable:$true] %s171_s8 }
   0xd   : > { %p1268_p11 = pnand %p726_p7, %p160_p9  ;;  %s1179_s9 = smov [#allocation4]  }
   0xe   : > { %s173_s10 = sshll.u32 %s1179_s9, 4  ;;  %s188_s13 = sshll.u32 %s1403_s3, 4  ;;  %s174_s10 = int_to_ptr.vmem [resolvable:$true] %s173_s10  ;;  %s189_s13 = int_to_ptr.hbm [resolvable:$true] %s188_s13 }
   0xf   : > { %p857_p12 = pneg %p1268_p11  ;;  %s1180_s14 = smov 64  }
  0x10   : > { %s1181_s15 = smov 4   ;;  %s1182_s16 = smov [#allocation6]  }
  0x11   : > { %p858_p13 = pnand %p857_p12, %p1406_p5  ;;  %s190_s17 = sshll.u32 %s1182_s16, 4  ;;  %s191_s17 = int_to_ptr.vmem [resolvable:$true] %s190_s17 }
  0x12   : > { %p729_p0 = scmp.ge.s32.totalorder %s1145_s21, 2 }
  0x13   : > { %860 = dma.hbm_to_vmem [thread:$0]  (!%p858_p13), %s172_s8, 1024, %s174_s10, [#allocation5], %s1180_s14, %s1180_s14, %s1181_s15  }
  0x14   : > { %863 = dma.hbm_to_vmem [thread:$0]  (!%p858_p13), %s189_s13, 1024, %s191_s17, [#allocation5], %s1180_s14, %s1180_s14, %s1181_s15  }
  0x15   : > { %203 = sbr.rel (%p729_p0) target bundleno = 62 (0x3e), region = 32 }
  0x1a   : > { %206 = sbr.rel (!%p1250_p4) target bundleno = 62 (0x3e), region = 36  ;;  %s207_s18 = sand.u32 (%p1250_p4), 1, %s1141_s20  }
  0x1b   : > { %s731_s24 = sshll.u32 (%p1250_p4), %s1145_s21, 1  ;;  %s730_s25 = sshll.u32 (%p1250_p4), %s207_s18, 3 }
  0x1c   : > { %s213_s6 = ssub.s32 (%p1250_p4), 3, %s731_s24  ;;  %s1290_s10 = scalar_lea.sflag (%p1250_p4), [#allocation3], %s207_s18 }
  0x1d   : > { %p214_p1 = scmp.lt.s32.totalorder (%p1250_p4), %s213_s6, 2  ;;  %s211_s11 = scalar_lea.vmem (%p1250_p4), [#allocation2], %s730_s25 }
  0x1f   : > { %s1419_s6 = smov (!%p214_p1, %s213_s6), 2 }
  0x20   : > { %s732_s7 = sshll.u32 %s1419_s6, 2 }
  0x21   : > { %s217_s8 = ssub.s32 8, %s732_s7 }
  0x22   : > { %s218_s9 = sshll.u32 %s217_s8, 4 }
  0x23   : > { %219 = vsyncadd %s1290_s10, %s218_s9  ;;  %p1293_p2 = scmp.ne.s32.totalorder %s732_s7, 0  ;;  %s827_s12 = sshll.u32 %s1145_s21, 3 }
  0x24   : > { %s222_s15 = scalar_lea.hbm %s1400_s0, %s827_s12  ;;  %s1301_s16 = sshll.u32 %s211_s11, 4  ;;  %s227_s16 = int_to_ptr.vmem [resolvable:$true] %s1301_s16 }
  0x25   : > { %s224_s17 = sshll.u32 %s222_s15, 4  ;;  %s736_s18 = sshll.u32 %s1419_s6, 6  ;;  %s1304_s17 = int_to_ptr.hbm [resolvable:$true] %s224_s17 }
  0x26   : > { %s1036_s24 = sshra.s32 %s1304_s17, 4  ;;  %s1038_s25 = sshrl.u32 %s736_s18, 4  ;;  %s1037_s24 = int_to_ptr.hbm [resolvable:$true] %s1036_s24 }
  0x27   : > { %s1043_s7 = scalar_lea.hbm %s1037_s24, %s1038_s25  ;;  %s1047_s9 = scalar_lea.hbm %s1400_s0, 12 }
  0x28   : > { %p1044_p3 = scmp.ne.s32.totalorder %s1037_s24, %s1043_s7  ;;  %p1048_p7 = scmp.lt.s32.totalorder %s1037_s24, %s1400_s0 }
  0x29   : > { %p1049_p9 = scmp.lt.s32.totalorder %s1047_s9, %s1043_s7 }
  0x2a   : > { %p1045_p4 = pnand %p1044_p3, %p1293_p2 }
  0x2b   : > { %p1050_p12 = por %p1049_p9, %p1048_p7 }
  0x2c   : > { %p1046_p6 = pneg %p1045_p4 }
  0x2e   : > { %p1051_p13 = pnand %p1050_p12, %p1046_p6 }
  0x30   : > { %1054 = shalt.err (!%p1051_p13)
}
  0x31   : > { %s1055_s13 = sshra.s32 %s227_s16, 4  ;;  %s1183_s15 = smov [#allocation2]   ;;  %s1056_s13 = int_to_ptr.vmem [resolvable:$true] %s1055_s13 }
  0x32   : > { %s1062_s14 = scalar_lea.vmem %s1056_s13, %s1038_s25  ;;  %s1066_s21 = scalar_lea.vmem %s1183_s15, 16 }
  0x33   : > { %p1063_p0 = scmp.ne.s32.totalorder %s1056_s13, %s1062_s14  ;;  %p1068_p4 = scmp.lt.s32.totalorder %s1066_s21, %s1062_s14 }
  0x35   : > { %p1064_p1 = pnand %p1063_p0, %p1293_p2 }
  0x37   : > { %p1065_p3 = pneg %p1064_p1 }
  0x39   : > { %p1070_p5 = pnand %p1068_p4, %p1065_p3 }
  0x3b   : > { %1073 = shalt.err (!%p1070_p5)
}
  0x3c   : > { %s1184_s24 = smov 64   ;;  %s1185_s7 = smov 4  }
  0x3d   : > { %232 = dma.hbm_to_vmem [thread:$0]  (%p1293_p2), %s1304_s17, %s736_s18, %s227_s16, %s1290_s10, %s1184_s24, %s1184_s24, %s1185_s7  }
  0x3e PF: > { %238 = sbr.rel (%p1268_p11) target bundleno = 426 (0x1aa), region = 40  ;;  %s1333_s25 = sand.u32 (!%p1268_p11), 1, %s1137_s19  }
  0x3f   : > { %s738_s8 = sshll.u32 (!%p1268_p11), %s1333_s25, 3  ;;  %s241_s9 = scalar_lea.sflag (!%p1268_p11), [#allocation3], %s1333_s25 }
  0x40   : > { %s244_s11 = scalar_lea.vmem (!%p1268_p11), [#allocation2], %s738_s8 }
  0x43   : > { %1124 = dma.done.wait (%p1259_p8), %s241_s9, 128  }
  0x44   : > { %1126 = vsyncadd (%p1259_p8), %s241_s9, 4294967168  ;;  %p1412_p5 = scmp.eq.s32.totalorder %s1235_s22, 0 }
  0x46   : > { %1128 = dma.done.wait (%p1412_p5), [#allocation5], 2048   ;;  %p1413_p2 = pmov %p1412_p5 }
  0x47   : > { %v836_v0 = vld [vmem:[#allocation4 + $0x38] sm:$0xff]  ;;  %v835_v1 = vld [vmem:[#allocation4 + $0x30] sm:$0xff]  ;;  %v834_v4 = vld [vmem:[#allocation4 + $0x28] sm:$0xff]  ;;  %s741_s27 = sshll.u32 %s1333_s25, 4  ;;  %vm472_vm0 = vcmask 130048   ;;  %s811_s17 = sshll.u32 (%p1264_p10), %s1235_s22, 1 }
  0x48   : > { %1130 = vsyncadd (%p1413_p2), [#allocation5], 4294965248  ;;  %367 = vmatpush.bf16.msra.mxu0 %v836_v0  ;;  %v844_v2 = vld [vmem:[#allocation6 + $0x38] sm:$0xff]  ;;  %v843_v3 = vld [vmem:[#allocation6 + $0x30] sm:$0xff]  ;;  %s1352_s16 = scalar_lea.vmem [#allocation7], %s741_s27   ;;  %s845_s18 = sshll.u32 (%p1264_p10), %s1235_s22, 4 }
  0x49   : > { %456 = vmatpush.bf16.msra.mxu1 %v844_v2  ;;  %v842_v5 = vld [vmem:[#allocation6 + $0x28] sm:$0xff]  ;;  %v833_v6 = vld [vmem:[#allocation4 + $0x20] sm:$0xff]  ;;  %v832_v8 = vld [vmem:[#allocation4 + $0x18] sm:$0xff]  ;;  %s483_s12 = ssub.s32 (%p1264_p10), 3, %s811_s17  ;;  %s1363_s15 = scalar_lea.vmem (%p1264_p10), %s1405_s5, %s845_s18  }
  0x4a   : > { %v841_v7 = vld [vmem:[#allocation6 + $0x20] sm:$0xff]  ;;  %v831_v9 = vld [vmem:[#allocation4 + $0x10] sm:$0xff]  ;;  %v830_v10 = vld [vmem:[#allocation4 + $0x8] sm:$0xff]  ;;  %p484_p8 = scmp.lt.s32.totalorder (%p1264_p10), %s483_s12, 2 }
  0x4b   : > { %v829_v11 = vld [vmem:[#allocation4] sm:$0xff]  ;;  %v828_v12 = vld [vmem:[%s244_s11] sm:$0xff]  ;;  %v838_v15 = vld [vmem:[#allocation6 + $0x8] sm:$0xff] }
  0x4c   : > { %368 = vmatpush.bf16.msra.mxu0 %v835_v1  ;;  %v840_v13 = vld [vmem:[#allocation6 + $0x18] sm:$0xff]  ;;  %v839_v14 = vld [vmem:[#allocation6 + $0x10] sm:$0xff]  ;;  %v837_v16 = vld [vmem:[#allocation6] sm:$0xff] }
  0x4d   : > { %457 = vmatpush.bf16.msra.mxu1 %v843_v3  ;;  %v970_v18 = vld [vmem:[%s1402_s2] ss:$0 sm:$0xff] }
  0x4e   : > { %v971_v25 = vld [vmem:[%s1404_s4] ss:$0 sm:$0xff] }
  0x50   : > { %369 = vmatpush.bf16.msra.mxu0 %v834_v4 }
  0x51   : > { %458 = vmatpush.bf16.msra.mxu1 %v842_v5 }
  0x54   : > { %370 = vmatpush.bf16.msra.mxu0 %v833_v6 }
  0x55   : > { %459 = vmatpush.bf16.msra.mxu1 %v841_v7 }
  0x58   : > { %371 = vmatpush.bf16.msra.mxu0 %v832_v8 }
  0x59   : > { %460 = vmatpush.bf16.msra.mxu1 %v840_v13 }
  0x5c   : > { %372 = vmatpush.bf16.msra.mxu0 %v831_v9 }
  0x5d   : > { %461 = vmatpush.bf16.msra.mxu1 %v839_v14 }
  0x60   : > { %373 = vmatpush.bf16.msra.mxu0 %v830_v10 }
  0x61   : > { %462 = vmatpush.bf16.msra.mxu1 %v838_v15 }
  0x64   : > { %374 = vmatpush.bf16.msra.mxu0 %v829_v11 }
  0x65   : > { %463 = vmatpush.bf16.msra.mxu1 %v837_v16 }
  0x67   : > { %375 = vmatmul.bf16.vlgmr.msra.gmra.mxu0 %v828_v12 }
  0xe4   : > { %v376_v17 = vpop.f32.mrf.mxu0 }
  0xe5   : > { %v377_v19 = vadd.f32 %v970_v18, %v376_v17 }
  0xe7   : > { %v385_v22 = vmax.f32 %v377_v19, 0.0 }
  0xec   : > { %v378_v20 = vpop.f32.mrf.mxu0 }
  0xed   : > { %v379_v21 = vadd.f32 %v970_v18, %v378_v20 }
  0xef   : > { %v386_v23 = vmax.f32 %v379_v21, 0.0 }
  0xf1   : > { %v387_v24 = vpack.c.bf16 %v386_v23, %v385_v22 }
  0xf3   : > { %464 = vmatmul.bf16.vlgmr.msra.gmra.mxu1 %v387_v24 }
 0x170   : > { %v465_v26 = vpop.f32.mrf.mxu1 }
 0x171   : > { %v466_v27 = vadd.f32 %v971_v25, %v465_v26 }
 0x173   : > { %972 = vtanh.f32 %v466_v27 }
 0x178   : > { %v467_v28 = vpop.f32.mrf.mxu1 }
 0x179   : > { %v973_v29 = vpop.eup %972  ;;  %v468_v30 = vadd.f32 %v971_v25, %v467_v28 }
 0x17a   : > { %473 = vst.msk [vmem:[%s1352_s16] sm:$0xff] %vm472_vm0, %v973_v29 }
 0x17b   : > { %974 = vtanh.f32 %v468_v30 }
 0x17e   : > { %481 = sbr.rel (!%p1264_p10) target bundleno = 426 (0x1aa), region = 56 }
 0x181   : > { %v975_v31 = vpop.eup %974 }
 0x182   : > { %474 = vst.msk [vmem:[%s1352_s16 + $0x8] sm:$0xff] %vm472_vm0, %v975_v31 }
 0x183   : > { %s1421_s12 = smov (!%p484_p8, %s483_s12), 2 }
 0x184   : > { %s812_s21 = sshll.u32 %s1421_s12, 3 }
 0x185   : > { %p815_p11 = scmp.eq.s32.totalorder %s812_s21, 0 }
 0x186   : > { %s1369_s29 = sshrl.u32 (!%p815_p11), %s1421_s12, 1 }
 0x187   : > { %492 = sbr.rel (%p815_p11) target bundleno = 426 (0x1aa), region = 60  ;;  %p816_p10 = scmp.le.s32.totalorder (!%p815_p11), %s1369_s29, 0 }
 0x18c   : > { %660 = sbr.rel (%p816_p10) target bundleno = 409 (0x199), region = 142  ;;  %s1147_s22 = smov (!%p816_p10), %s1363_s15  }
 0x18d   : > { %s1151_s24 = smov (!%p816_p10), %s1352_s16   ;;  %s1155_s7 = smov (!%p816_p10), 0  }
 0x18e   : > { %s1159_s25 = smov (!%p816_p10), 0  }
 0x191 LB: >> { %v557_v32 = vld [vmem:[%s1153_s24] sm:$0xff]  ;;  %v559_v33 = vld [vmem:[%s1153_s24 + $0x8] sm:$0xff]  ;;  %s561_s8 = sadd.s32 1, %s1157_s7  ;;  %s551_s25 = sadd.s32 1, %s1161_s25   ;;  %s1161_s25 = sphi %s1159_s25, %s551_s25   ;;  %s1157_s7 = sphi %s1155_s7, %s1156_s7   ;;  %s1153_s24 = sphi %s1151_s24, %s566_s24   ;;  %s1149_s22 = sphi %s1147_s22, %s567_s22  }
 0x192   : >> { %558 = vst [vmem:[%s1149_s22] sm:$0xff] %v557_v32  ;;  %p562_p6 = scmp.ge.s32.totalorder %s561_s8, %s1369_s29  ;;  %p550_p7 = scmp.ge.s32.totalorder %s551_s25, %s1369_s29 }
 0x193   : >> { %560 = vst [vmem:[%s1149_s22 + $0x8] sm:$0xff] %v559_v33 }
 0x194   : >> { %s1423_s8 = smov (%p562_p6, %s561_s8), 0  ;;  %553 = sbr.rel (!%p550_p7) target bundleno = 401 (0x191), region = 148 }
 0x195   : >> { %s817_s9 = sshll.u32 %s1423_s8, 4  ;;  %s1156_s7 = smov %s1423_s8  }
 0x196   : >> { %s566_s24 = scalar_lea.vmem %s1352_s16, %s817_s9 [#allocation7]   ;;  %s567_s22 = scalar_lea.vmem %s1363_s15, %s817_s9  }
 0x199 PF: > { %s1379_s11 = sand.u32 1, %s1421_s12   ;;  %s846_s28 = sshll.u32 %s1369_s29, 4 }
 0x19a   : > { %s572_s30 = scalar_lea.vmem %s1352_s16, %s846_s28 [#allocation7]   ;;  %s574_s6 = scalar_lea.vmem %s1363_s15, %s846_s28  }
 0x19b   : > { %p822_p9 = scmp.le.s32.totalorder %s1379_s11, 0 }
 0x19c   : > { %s1163_s10 = smov (!%p822_p9), %s574_s6   ;;  %s1167_s27 = smov (!%p822_p9), %s572_s30  }
 0x19d   : > { %674 = sbr.rel (%p822_p9) target bundleno = 426 (0x1aa), region = 153  ;;  %s1171_s17 = smov (!%p822_p9), 0  }
 0x19e   : > { %s1175_s18 = smov (!%p822_p9), 0  }
 0x1a2 LB: >> { %v584_v34 = vld [vmem:[%s1169_s27] sm:$0xff]  ;;  %s586_s12 = sadd.s32 1, %s1173_s17  ;;  %s578_s18 = sadd.s32 1, %s1177_s18   ;;  %s1177_s18 = sphi %s1175_s18, %s578_s18   ;;  %s1173_s17 = sphi %s1171_s17, %s1172_s17   ;;  %s1169_s27 = sphi %s1167_s27, %s591_s27   ;;  %s1165_s10 = sphi %s1163_s10, %s592_s10  }
 0x1a3   : >> { %585 = vst [vmem:[%s1165_s10] sm:$0xff] %v584_v34  ;;  %p587_p12 = scmp.ge.s32.totalorder %s586_s12, %s1379_s11  ;;  %p577_p13 = scmp.ge.s32.totalorder %s578_s18, %s1379_s11 }
 0x1a5   : >> { %s1425_s12 = smov (%p587_p12, %s586_s12), 0  ;;  %580 = sbr.rel (!%p577_p13) target bundleno = 418 (0x1a2), region = 159 }
 0x1a6   : >> { %s823_s16 = sshll.u32 %s1425_s12, 3  ;;  %s1172_s17 = smov %s1425_s12  }
 0x1a7   : >> { %s591_s27 = scalar_lea.vmem %s572_s30, %s823_s16 [#allocation7]   ;;  %s592_s10 = scalar_lea.vmem %s574_s6, %s823_s16  }
 0x1aa PF: > { %p16_p0 = scmp.ge.s32.totalorder %s1238_s23, 4   ;;  %s1414_s18 = smov %s1137_s19 }
 0x1ab   : > { %s1415_s19 = smov %s1141_s20  ;;  %s1416_s20 = smov %s1248_s26 }
 0x1ac   : > { %s1417_s21 = smov %s1238_s23  ;;  %18 = sbr.rel (!%p16_p0) target bundleno = 4 (0x4), region = 170 }
 0x1b1   :  { %608 = vsyncpa [#allocation3], 1 }
 0x1b2   :  { %610 = vsyncpa [#allocation3 + $0x1], 1 }
 0x1b3   :  { %611 = vsyncpa [#allocation5], 1 }

</bundles_post_ra>
